<compile_context>
chip_gen: v7x
topology: tpu7x:2x2x1
jax: 0.10.0
libtpu: 0.0.40
codegen_flags: <defaults>
</compile_context>

<pallas_src>
import functools

import jax
import jax.numpy as jnp
from jax.experimental import pallas as pl
from jax.experimental.pallas import tpu as pltpu

_LANE = 128
_EPS = 1e-4
_CHUNK_ROWS = 64  # 8 f32 vregs per stream per inner step; keeps temps in vregs


def _silog_partial_kernel(pred_ref, target_ref, mask_ref, out_ref, *,
                          block_rows, total_rows, needs_row_mask):
    """Per-block partial sums: out_ref (3,128) = [sum d, sum d*d, valid count]."""
    eps = jnp.float32(_EPS)

    # Inner chunk: small enough that d / d*d / cnt stay in vregs (no VMEM
    # round-trip of full-block temporaries), large enough to amortize the loop.
    # Keep chunk starts aligned to the (32,128) int8/bool tile.
    if block_rows % _CHUNK_ROWS == 0:
        chunk = _CHUNK_ROWS
    elif block_rows % 32 == 0:
        chunk = 32
    else:
        chunk = block_rows          # small / oddly-sized single-block case
    num_chunks = block_rows // chunk

    if needs_row_mask:
        block_base = pl.program_id(0) * block_rows
        chunk_rows = jax.lax.broadcasted_iota(jnp.int32, (chunk, _LANE), 0)

    def body(c, carry):
        acc_d, acc_d2, acc_n = carry
        r0 = c * chunk
        if not isinstance(c, int):
            r0 = pl.multiple_of(r0, chunk)

        valid = mask_ref[pl.ds(r0, chunk), :]
        if valid.dtype != jnp.bool_:
            valid = valid != 0
        if needs_row_mask:
            # The final grid block may extend past `total_rows`; that VMEM
            # region is unspecified, so exclude it by global row index.
            valid = valid & ((chunk_rows + (block_base + r0)) < total_rows)

        p = jnp.maximum(pred_ref[pl.ds(r0, chunk), :].astype(jnp.float32), eps)
        t = jnp.maximum(target_ref[pl.ds(r0, chunk), :].astype(jnp.float32), eps)
        # One EUP log per element: log(t) - log(p) == log(t / p).
        # The post-log select keeps garbage/NaN out of the sums (required).
        d = jnp.where(valid, jnp.log(t / p), 0.0)
        n = valid.astype(jnp.float32)

        acc_d = acc_d + jnp.sum(d, axis=0, keepdims=True)
        acc_d2 = acc_d2 + jnp.sum(d * d, axis=0, keepdims=True)
        acc_n = acc_n + jnp.sum(n, axis=0, keepdims=True)
        return acc_d, acc_d2, acc_n

    zero = jnp.zeros((1, _LANE), jnp.float32)
    init = (zero, zero, zero)
    if num_chunks == 1:
        acc_d, acc_d2, acc_n = body(0, init)
    else:
        acc_d, acc_d2, acc_n = jax.lax.fori_loop(
            0, num_chunks, body, init, unroll=2)

    # Direct row stores (no concatenate / sublane relayout).
    out_ref[0:1, :] = acc_d
    out_ref[1:2, :] = acc_d2
    out_ref[2:3, :] = acc_n


def silog_loss(pred, target, valid_mask, lambd=0.5, block_rows=4096):
    """SiLog depth loss (forward). pred/target: float arrays; valid_mask: bool."""
    p = pred.reshape(-1)                       # keep native dtype (HBM bytes!)
    t = target.reshape(-1)
    m = valid_mask.reshape(-1)
    if m.dtype not in (jnp.bool_, jnp.int8, jnp.uint8):
        m = m != 0                             # normalize to 1 byte/elem once

    n = p.shape[0]
    rows = n // _LANE
    tail = n - rows * _LANE

    s = ss = cnt = jnp.float32(0.0)

    if rows > 0:
        if tail:
            # TODO(synk): prefix slice may still copy in XLA; it is cheaper than
            # the old jnp.pad of all three streams and never taken for typical
            # NCHW depth maps (numel % 128 == 0).
            lim = rows * _LANE
            pm = jax.lax.slice(p, (0,), (lim,)).reshape(rows, _LANE)
            tm = jax.lax.slice(t, (0,), (lim,)).reshape(rows, _LANE)
            mm = jax.lax.slice(m, (0,), (lim,)).reshape(rows, _LANE)
        else:
            pm = p.reshape(rows, _LANE)
            tm = t.reshape(rows, _LANE)
            mm = m.reshape(rows, _LANE)

        br = min(block_rows, rows)
        if br < rows:
            # Sub-full blocks must respect the (32, 128) int8/bool tile.
            br = max(32, (br // 32) * 32)
            br = min(br, rows)
        num_blocks = pl.cdiv(rows, br)
        needs_row_mask = (rows % br) != 0

        kernel = functools.partial(
            _silog_partial_kernel,
            block_rows=br, total_rows=rows, needs_row_mask=needs_row_mask)

        call = pl.pallas_call(
            kernel,
            out_shape=jax.ShapeDtypeStruct((num_blocks, 3, _LANE), jnp.float32),
            grid_spec=pltpu.PrefetchScalarGridSpec(
                num_scalar_prefetch=0,
                grid=(num_blocks,),
                in_specs=[
                    pl.BlockSpec((br, _LANE), lambda i: (i, 0)),
                    pl.BlockSpec((br, _LANE), lambda i: (i, 0)),
                    pl.BlockSpec((br, _LANE), lambda i: (i, 0)),
                ],
                out_specs=pl.BlockSpec((None, 3, _LANE), lambda i: (i, 0, 0)),
            ),
            compiler_params=pltpu.CompilerParams(
                # "parallel" allows megacore sharding of the grid on multi-TC
                # parts (v7x).  TODO(synk): verify in a v7x trace that both TCs
                # are busy; if not, switch this axis to pltpu.CORE_PARALLEL.
                dimension_semantics=("parallel",),
                vmem_limit_bytes=32 * 1024 * 1024),
        )
        try:
            partials = call(pm, tm, mm)
        except Exception:
            # Fallback for Pallas builds without bool-ref support: one extra
            # mask pass, identical math.
            partials = call(pm, tm, mm.astype(jnp.int8))

        totals = jnp.sum(partials, axis=(0, 2))   # (3,): [sum_d, sum_d2, count]
        s, ss, cnt = totals[0], totals[1], totals[2]

    if tail:
        eps = jnp.float32(_EPS)
        tp = jnp.maximum(p[rows * _LANE:].astype(jnp.float32), eps)
        tt = jnp.maximum(t[rows * _LANE:].astype(jnp.float32), eps)
        tv = m[rows * _LANE:]
        tv = tv if tv.dtype == jnp.bool_ else (tv != 0)
        td = jnp.where(tv, jnp.log(tt / tp), 0.0)
        s = s + jnp.sum(td)
        ss = ss + jnp.sum(td * td)
        cnt = cnt + jnp.sum(tv.astype(jnp.float32))

    mean = s / cnt
    # TODO(synk): PyTorch raises ValueError on NaN loss; cannot raise inside a
    # TPU computation.  Tiny negative rounding residue is clamped before sqrt;
    # an all-false mask still yields NaN (0/0), propagated to the caller.
    return jnp.sqrt(jnp.maximum(ss / cnt - jnp.float32(lambd) * mean * mean, 0.0))


def silog_loss_ref(pred, target, valid_mask, lambd=0.5):
    """Plain-JAX reference (masked-mean formulation, matches PyTorch math)."""
    eps = 1e-4
    p = jnp.maximum(pred.astype(jnp.float32), eps)
    t = jnp.maximum(target.astype(jnp.float32), eps)
    m = valid_mask.astype(jnp.float32)
    d = (jnp.log(t) - jnp.log(p)) * m
    c = jnp.sum(m)
    mean = jnp.sum(d) / c
    mean_sq = jnp.sum(d * d) / c
    return jnp.sqrt(mean_sq - lambd * mean * mean)


if __name__ == "__main__":
    key = jax.random.PRNGKey(0)
    k1, k2, k3 = jax.random.split(key, 3)

    shape = (2, 4, 16, 16)  # NCHW depth-map-like layout
    pred = jax.random.uniform(k1, shape, jnp.float32, minval=0.0, maxval=10.0)
    target = jax.random.uniform(k2, shape, jnp.float32, minval=0.0, maxval=10.0)
    valid_mask = jax.random.uniform(k3, shape, jnp.float32) > 0.3  # bool mask

    loss = jax.block_until_ready(silog_loss(pred, target, valid_mask, lambd=0.5))
    ref = jax.block_until_ready(silog_loss_ref(pred, target, valid_mask, lambd=0.5))

    assert jnp.isfinite(loss), "nan loss in depth loss"
    assert jnp.allclose(loss, ref, rtol=1e-5, atol=1e-5), (loss, ref)

    print("KERNEL_OK")
</pallas_src>

<mosaic_0001>
module attributes {stable_mosaic.version = 11 : i64} {
  func.func @_silog_partial_kernel(%arg0: i32, %arg1: memref<16x128xf32, #tpu.memory_space<vmem>>, %arg2: memref<16x128xf32, #tpu.memory_space<vmem>>, %arg3: memref<16x128xi32, #tpu.memory_space<vmem>>, %arg4: memref<1x3x128xf32, #tpu.memory_space<vmem>>) attributes {dimension_semantics = [#tpu.dimension_semantics<parallel>], iteration_bounds = array<i64: 1>, scalar_prefetch = 0 : i64, scratch_operands = 0 : i64, tpu.core_type = #tpu.core_type<tc>, window_params = [{transform_indices = @transform_0, window_bounds = array<i64: 16, 128>}, {transform_indices = @transform_1, window_bounds = array<i64: 16, 128>}, {transform_indices = @transform_2, window_bounds = array<i64: 16, 128>}, {transform_indices = @transform_3, window_bounds = array<i64: 1, 3, 128>}]} {
    %cst = arith.constant 0.000000e+00 : f32
    %0 = vector.broadcast %cst : f32 to vector<1x128xf32>
    %c0 = arith.constant 0 : index
    %c0_0 = arith.constant 0 : index
    %1 = vector.load %arg3[%c0, %c0_0] : memref<16x128xi32, #tpu.memory_space<vmem>>, vector<16x128xi32>
    %cst_1 = arith.constant dense<0> : vector<16x128xi32>
    %2 = arith.cmpi ne, %1, %cst_1 : vector<16x128xi32>
    %c0_2 = arith.constant 0 : index
    %c0_3 = arith.constant 0 : index
    %3 = vector.load %arg1[%c0_2, %c0_3] : memref<16x128xf32, #tpu.memory_space<vmem>>, vector<16x128xf32>
    %cst_4 = arith.constant 9.99999974E-5 : f32
    %4 = vector.broadcast %cst_4 : f32 to vector<16x128xf32>
    %5 = arith.maximumf %3, %4 : vector<16x128xf32>
    %c0_5 = arith.constant 0 : index
    %c0_6 = arith.constant 0 : index
    %6 = vector.load %arg2[%c0_5, %c0_6] : memref<16x128xf32, #tpu.memory_space<vmem>>, vector<16x128xf32>
    %cst_7 = arith.constant 9.99999974E-5 : f32
    %7 = vector.broadcast %cst_7 : f32 to vector<16x128xf32>
    %8 = arith.maximumf %6, %7 : vector<16x128xf32>
    %9 = arith.divf %8, %5 : vector<16x128xf32>
    %10 = math.log %9 : vector<16x128xf32>
    %cst_8 = arith.constant 0.000000e+00 : f32
    %11 = vector.broadcast %cst_8 : f32 to vector<16x128xf32>
    %12 = arith.select %2, %10, %11 : vector<16x128xi1>, vector<16x128xf32>
    %13 = arith.extui %2 : vector<16x128xi1> to vector<16x128xi32>
    %14 = arith.sitofp %13 : vector<16x128xi32> to vector<16x128xf32>
    %cst_9 = arith.constant dense<0.000000e+00> : vector<128xf32>
    %15 = vector.multi_reduction <add>, %12, %cst_9 [0] : vector<16x128xf32> to vector<128xf32>
    %16 = vector.shape_cast %15 : vector<128xf32> to vector<1x128xf32>
    %17 = arith.addf %0, %16 : vector<1x128xf32>
    %18 = arith.mulf %12, %12 : vector<16x128xf32>
    %cst_10 = arith.constant dense<0.000000e+00> : vector<128xf32>
    %19 = vector.multi_reduction <add>, %18, %cst_10 [0] : vector<16x128xf32> to vector<128xf32>
    %20 = vector.shape_cast %19 : vector<128xf32> to vector<1x128xf32>
    %21 = arith.addf %0, %20 : vector<1x128xf32>
    %cst_11 = arith.constant dense<0.000000e+00> : vector<128xf32>
    %22 = vector.multi_reduction <add>, %14, %cst_11 [0] : vector<16x128xf32> to vector<128xf32>
    %23 = vector.shape_cast %22 : vector<128xf32> to vector<1x128xf32>
    %24 = arith.addf %0, %23 : vector<1x128xf32>
    %c0_12 = arith.constant 0 : index
    %c0_13 = arith.constant 0 : index
    %c0_14 = arith.constant 0 : index
    %25 = vector.load %arg4[%c0_12, %c0_13, %c0_14] : memref<1x3x128xf32, #tpu.memory_space<vmem>>, vector<1x1x128xf32>
    %26 = vector.shape_cast %25 : vector<1x1x128xf32> to vector<1x128xf32>
    %27 = vector.shape_cast %17 : vector<1x128xf32> to vector<1x1x128xf32>
    tpu.vector_store %arg4[%c0_12, %c0_13, %c0_14], %27 {strides = array<i32>} : memref<1x3x128xf32, #tpu.memory_space<vmem>>, vector<1x1x128xf32>,
    %c0_15 = arith.constant 0 : index
    %c1 = arith.constant 1 : index
    %c0_16 = arith.constant 0 : index
    %28 = vector.load %arg4[%c0_15, %c1, %c0_16] : memref<1x3x128xf32, #tpu.memory_space<vmem>>, vector<1x1x128xf32>
    %29 = vector.shape_cast %28 : vector<1x1x128xf32> to vector<1x128xf32>
    %30 = vector.shape_cast %21 : vector<1x128xf32> to vector<1x1x128xf32>
    tpu.vector_store %arg4[%c0_15, %c1, %c0_16], %30 {strides = array<i32>} : memref<1x3x128xf32, #tpu.memory_space<vmem>>, vector<1x1x128xf32>,
    %c0_17 = arith.constant 0 : index
    %c2 = arith.constant 2 : index
    %c0_18 = arith.constant 0 : index
    %31 = vector.load %arg4[%c0_17, %c2, %c0_18] : memref<1x3x128xf32, #tpu.memory_space<vmem>>, vector<1x1x128xf32>
    %32 = vector.shape_cast %31 : vector<1x1x128xf32> to vector<1x128xf32>
    %33 = vector.shape_cast %24 : vector<1x128xf32> to vector<1x1x128xf32>
    tpu.vector_store %arg4[%c0_17, %c2, %c0_18], %33 {strides = array<i32>} : memref<1x3x128xf32, #tpu.memory_space<vmem>>, vector<1x1x128xf32>,
    return
  }
  func.func @transform_0(%arg0: i32) -> (i32, i32) {
    %c0_i32 = arith.constant 0 : i32
    %c0_i32_0 = arith.constant 0 : i32
    return %arg0, %c0_i32 : i32, i32
  }
  func.func @transform_1(%arg0: i32) -> (i32, i32) {
    %c0_i32 = arith.constant 0 : i32
    %c0_i32_0 = arith.constant 0 : i32
    return %arg0, %c0_i32 : i32, i32
  }
  func.func @transform_2(%arg0: i32) -> (i32, i32) {
    %c0_i32 = arith.constant 0 : i32
    %c0_i32_0 = arith.constant 0 : i32
    return %arg0, %c0_i32 : i32, i32
  }
  func.func @transform_3(%arg0: i32) -> (i32, i32, i32) {
    %c0_i32 = arith.constant 0 : i32
    %c0_i32_0 = arith.constant 0 : i32
    %c0_i32_1 = arith.constant 0 : i32
    return %arg0, %c0_i32, %c0_i32_0 : i32, i32, i32
  }
}

module attributes {stable_mosaic.version = 11 : i64} {
  func.func @_silog_partial_kernel(%arg0: i32, %arg1: memref<16x128xf32, #tpu.memory_space<vmem>>, %arg2: memref<16x128xf32, #tpu.memory_space<vmem>>, %arg3: memref<16x128xi8, #tpu.memory_space<vmem>>, %arg4: memref<1x3x128xf32, #tpu.memory_space<vmem>>) attributes {dimension_semantics = [#tpu.dimension_semantics<parallel>], iteration_bounds = array<i64: 1>, scalar_prefetch = 0 : i64, scratch_operands = 0 : i64, tpu.core_type = #tpu.core_type<tc>, window_params = [{transform_indices = @transform_0, window_bounds = array<i64: 16, 128>}, {transform_indices = @transform_1, window_bounds = array<i64: 16, 128>}, {transform_indices = @transform_2, window_bounds = array<i64: 16, 128>}, {transform_indices = @transform_3, window_bounds = array<i64: 1, 3, 128>}]} {
    %cst = arith.constant 0.000000e+00 : f32
    %0 = vector.broadcast %cst : f32 to vector<1x128xf32>
    %c0 = arith.constant 0 : index
    %c0_0 = arith.constant 0 : index
    %1 = vector.load %arg3[%c0, %c0_0] : memref<16x128xi8, #tpu.memory_space<vmem>>, vector<16x128xi8>
    %c0_i8 = arith.constant 0 : i8
    %2 = vector.broadcast %c0_i8 : i8 to vector<16x128xi8>
    %3 = arith.cmpi ne, %1, %2 : vector<16x128xi8>
    %c0_1 = arith.constant 0 : index
    %c0_2 = arith.constant 0 : index
    %4 = vector.load %arg1[%c0_1, %c0_2] : memref<16x128xf32, #tpu.memory_space<vmem>>, vector<16x128xf32>
    %cst_3 = arith.constant 9.99999974E-5 : f32
    %5 = vector.broadcast %cst_3 : f32 to vector<16x128xf32>
    %6 = arith.maximumf %4, %5 : vector<16x128xf32>
    %c0_4 = arith.constant 0 : index
    %c0_5 = arith.constant 0 : index
    %7 = vector.load %arg2[%c0_4, %c0_5] : memref<16x128xf32, #tpu.memory_space<vmem>>, vector<16x128xf32>
    %cst_6 = arith.constant 9.99999974E-5 : f32
    %8 = vector.broadcast %cst_6 : f32 to vector<16x128xf32>
    %9 = arith.maximumf %7, %8 : vector<16x128xf32>
    %10 = arith.divf %9, %6 : vector<16x128xf32>
    %11 = math.log %10 : vector<16x128xf32>
    %cst_7 = arith.constant 0.000000e+00 : f32
    %12 = vector.broadcast %cst_7 : f32 to vector<16x128xf32>
    %13 = arith.select %3, %11, %12 : vector<16x128xi1>, vector<16x128xf32>
    %14 = arith.extui %3 : vector<16x128xi1> to vector<16x128xi32>
    %15 = arith.sitofp %14 : vector<16x128xi32> to vector<16x128xf32>
    %cst_8 = arith.constant dense<0.000000e+00> : vector<128xf32>
    %16 = vector.multi_reduction <add>, %13, %cst_8 [0] : vector<16x128xf32> to vector<128xf32>
    %17 = vector.shape_cast %16 : vector<128xf32> to vector<1x128xf32>
    %18 = arith.addf %0, %17 : vector<1x128xf32>
    %19 = arith.mulf %13, %13 : vector<16x128xf32>
    %cst_9 = arith.constant dense<0.000000e+00> : vector<128xf32>
    %20 = vector.multi_reduction <add>, %19, %cst_9 [0] : vector<16x128xf32> to vector<128xf32>
    %21 = vector.shape_cast %20 : vector<128xf32> to vector<1x128xf32>
    %22 = arith.addf %0, %21 : vector<1x128xf32>
    %cst_10 = arith.constant dense<0.000000e+00> : vector<128xf32>
    %23 = vector.multi_reduction <add>, %15, %cst_10 [0] : vector<16x128xf32> to vector<128xf32>
    %24 = vector.shape_cast %23 : vector<128xf32> to vector<1x128xf32>
    %25 = arith.addf %0, %24 : vector<1x128xf32>
    %c0_11 = arith.constant 0 : index
    %c0_12 = arith.constant 0 : index
    %c0_13 = arith.constant 0 : index
    %26 = vector.load %arg4[%c0_11, %c0_12, %c0_13] : memref<1x3x128xf32, #tpu.memory_space<vmem>>, vector<1x1x128xf32>
    %27 = vector.shape_cast %26 : vector<1x1x128xf32> to vector<1x128xf32>
    %28 = vector.shape_cast %18 : vector<1x128xf32> to vector<1x1x128xf32>
    tpu.vector_store %arg4[%c0_11, %c0_12, %c0_13], %28 {strides = array<i32>} : memref<1x3x128xf32, #tpu.memory_space<vmem>>, vector<1x1x128xf32>,
    %c0_14 = arith.constant 0 : index
    %c1 = arith.constant 1 : index
    %c0_15 = arith.constant 0 : index
    %29 = vector.load %arg4[%c0_14, %c1, %c0_15] : memref<1x3x128xf32, #tpu.memory_space<vmem>>, vector<1x1x128xf32>
    %30 = vector.shape_cast %29 : vector<1x1x128xf32> to vector<1x128xf32>
    %31 = vector.shape_cast %22 : vector<1x128xf32> to vector<1x1x128xf32>
    tpu.vector_store %arg4[%c0_14, %c1, %c0_15], %31 {strides = array<i32>} : memref<1x3x128xf32, #tpu.memory_space<vmem>>, vector<1x1x128xf32>,
    %c0_16 = arith.constant 0 : index
    %c2 = arith.constant 2 : index
    %c0_17 = arith.constant 0 : index
    %32 = vector.load %arg4[%c0_16, %c2, %c0_17] : memref<1x3x128xf32, #tpu.memory_space<vmem>>, vector<1x1x128xf32>
    %33 = vector.shape_cast %32 : vector<1x1x128xf32> to vector<1x128xf32>
    %34 = vector.shape_cast %25 : vector<1x128xf32> to vector<1x1x128xf32>
    tpu.vector_store %arg4[%c0_16, %c2, %c0_17], %34 {strides = array<i32>} : memref<1x3x128xf32, #tpu.memory_space<vmem>>, vector<1x1x128xf32>,
    return
  }
  func.func @transform_0(%arg0: i32) -> (i32, i32) {
    %c0_i32 = arith.constant 0 : i32
    %c0_i32_0 = arith.constant 0 : i32
    return %arg0, %c0_i32 : i32, i32
  }
  func.func @transform_1(%arg0: i32) -> (i32, i32) {
    %c0_i32 = arith.constant 0 : i32
    %c0_i32_0 = arith.constant 0 : i32
    return %arg0, %c0_i32 : i32, i32
  }
  func.func @transform_2(%arg0: i32) -> (i32, i32) {
    %c0_i32 = arith.constant 0 : i32
    %c0_i32_0 = arith.constant 0 : i32
    return %arg0, %c0_i32 : i32, i32
  }
  func.func @transform_3(%arg0: i32) -> (i32, i32, i32) {
    %c0_i32 = arith.constant 0 : i32
    %c0_i32_0 = arith.constant 0 : i32
    %c0_i32_1 = arith.constant 0 : i32
    return %arg0, %c0_i32, %c0_i32_0 : i32, i32, i32
  }
}

</mosaic_0001>

<bundles_post_ra>
// kernel: tpu_custom_call.1
= control target key start
LH: loop header
LB: loop body
LE: loop exit
PB: predicated region body
PF: predicated region fallthrough
CT: control target
= control target key end

     0   :  { %8 = vsyncpa [#allocation3], 0  ;;  %s126_s12 = smov [#allocation2]   ;;  %s187_s0 = inlined_call_operand.vmem [shape: f32[16,128], index: 0, kind: input, shape index: {}]   ;;  %s188_s1 = inlined_call_operand.hbm [shape: f32[16,128], index: 1, kind: input, shape index: {}]   ;;  %s189_s2 = inlined_call_operand.vmem [shape: s32[16,128], index: 2, kind: input, shape index: {}]   ;;  %s190_s3 = inlined_call_operand.vmem [shape: f32[1,3,128], index: 3, kind: output, shape index: {}]  }
   0x1   :  { %s16_s13 = sshll.u32 %s126_s12, 4  ;;  %s102_s16 = scalar_lea.hbm %s188_s1, 256  ;;  %s17_s13 = int_to_ptr.vmem [resolvable:$true] %s16_s13 }
   0x2   :  { %p103_p0 = scmp.ne.s32.totalorder %s188_s1, %s102_s16  ;;  %p106_p1 = scmp.lt.u32.totalorder %s102_s16, %s188_s1 }
   0x4   :  { %p108_p2 = pnand %p106_p1, %p103_p0 }
   0x6   :  { %111 = shalt.err (!%p108_p2)
}
   0x7   :  { %s112_s21 = scalar_lea.vmem %s17_s13, 256  ;;  %p117_p4 = scmp.lt.s32.totalorder %s17_s13, %s17_s13 }
   0x8   :  { %p113_p3 = scmp.ne.s32.totalorder %s17_s13, %s112_s21  ;;  %p118_p5 = scmp.lt.s32.totalorder %s112_s21, %s112_s21 }
   0xa   :  { %p119_p6 = por %p118_p5, %p117_p4 }
   0xc   :  { %p120_p7 = pnand %p119_p6, %p113_p3 }
   0xe   :  { %123 = shalt.err (!%p120_p7)
}
   0xf   :  { %s127_s22 = smov 128   ;;  %s128_s23 = smov 8  }
  0x10   :  { %22 = dma.hbm_to_vmem [thread:$0]  %s188_s1, 256, %s17_s13, [#allocation3], %s127_s22, %s127_s22, %s128_s23  }
  0x11   :  { %124 = dma.done.wait [#allocation3], 256  }
  0x12   :  { %125 = vsyncadd [#allocation3], 4294967040  ;;  %v28_v0 = vld [vmem:[%s189_s2] sm:$0xff]  ;;  %v29_v1 = vld [vmem:[%s189_s2 + $0x8] sm:$0xff]  ;;  %v129_v6 = vmov 0.0  }
  0x13   :  { %v32_v2 = vld [vmem:[%s187_s0] sm:$0xff]  ;;  %vm30_vm0 = vcmp.ne.s32.totalorder %v28_v0, 0  ;;  %v33_v3 = vld [vmem:[%s187_s0 + $0x8] sm:$0xff]  ;;  %vm31_vm1 = vcmp.ne.s32.totalorder %v29_v1, 0 }
  0x14   :  { %v34_v4 = vmax.f32 %v32_v2, 0.0001  ;;  %v35_v5 = vmax.f32 %v33_v3, 0.0001  ;;  %v88_v7 = vsel %vm30_vm0, 1.0, %v129_v6  ;;  %v89_v8 = vsel %vm31_vm1, 1.0, %v129_v6 }
  0x15   :  { %v72_v9 = vadd.f32 %v89_v8, %v88_v7  ;;  %v36_v11 = vld [vmem:[#allocation2] sm:$0xff]  ;;  %v37_v12 = vld [vmem:[#allocation2 + $0x8] sm:$0xff] }
  0x16   :  { %94 = vrcp.f32 %v34_v4  ;;  %v38_v14 = vmax.f32 %v36_v11, 0.0001  ;;  %v39_v16 = vmax.f32 %v37_v12, 0.0001 }
  0x17   :  { %96 = vrcp.f32 %v35_v5  ;;  %v73_v10 = vrot.slane %v72_v9, 4 }
  0x19   :  { %v74_v13 = vadd.f32 %v73_v10, %v72_v9 }
  0x1b   :  { %v75_v15 = vrot.slane %v74_v13, 2 }
  0x1d   :  { %v76_v17 = vadd.f32 %v75_v15, %v74_v13 }
  0x1f   :  { %v77_v21 = vrot.slane %v76_v17, 1 }
  0x20   :  { %v95_v18 = vpop.eup %94 }
  0x21   :  { %v97_v19 = vpop.eup %96  ;;  %v41_v20 = vmul.f32 %v95_v18, %v38_v14  ;;  %v78_v23 = vadd.f32 %v77_v21, %v76_v17 }
  0x22   :  { %v43_v22 = vmul.f32 %v97_v19, %v39_v16 }
  0x23   :  { %98 = vlog2.f32 %v41_v20  ;;  %82 = vst [vmem:[%s190_s3 + $0x2] sm:$0x1] %v78_v23 }
  0x24   :  { %100 = vlog2.f32 %v43_v22 }
  0x2d   :  { %v99_v24 = vpop.eup %98 }
  0x2e   :  { %v101_v25 = vpop.eup %100  ;;  %v45_v26 = vmul.f32 0.6931472, %v99_v24 }
  0x2f   :  { %v47_v27 = vmul.f32 0.6931472, %v101_v25 }
  0x30   :  { %v48_v28 = vsel %vm30_vm0, %v45_v26, 0.0 }
  0x31   :  { %v49_v29 = vsel %vm31_vm1, %v47_v27, 0.0  ;;  %v62_v30 = vmul.f32 %v48_v28, %v48_v28 }
  0x32   :  { %v54_v31 = vadd.f32 %v49_v29, %v48_v28  ;;  %v63_v32 = vmul.f32 %v49_v29, %v49_v29 }
  0x34   :  { %v55_v33 = vrot.slane %v54_v31, 4  ;;  %v64_v34 = vadd.f32 %v63_v32, %v62_v30 }
  0x36   :  { %v56_v35 = vadd.f32 %v55_v33, %v54_v31  ;;  %v65_v36 = vrot.slane %v64_v34, 4 }
  0x38   :  { %v57_v37 = vrot.slane %v56_v35, 2  ;;  %v66_v38 = vadd.f32 %v65_v36, %v64_v34 }
  0x3a   :  { %v58_v39 = vadd.f32 %v57_v37, %v56_v35  ;;  %v67_v40 = vrot.slane %v66_v38, 2 }
  0x3c   :  { %v59_v41 = vrot.slane %v58_v39, 1  ;;  %v68_v42 = vadd.f32 %v67_v40, %v66_v38 }
  0x3e   :  { %v60_v43 = vadd.f32 %v59_v41, %v58_v39  ;;  %v69_v44 = vrot.slane %v68_v42, 1 }
  0x40   :  { %80 = vst [vmem:[%s190_s3] sm:$0x1] %v60_v43  ;;  %v70_v45 = vadd.f32 %v69_v44, %v68_v42 }
  0x42   :  { %81 = vst [vmem:[%s190_s3 + $0x1] sm:$0x1] %v70_v45 }
  0x43   :  { %87 = vsyncpa [#allocation3], 1 }

// kernel: tpu_custom_call.1
= control target key start
LH: loop header
LB: loop body
LE: loop exit
PB: predicated region body
PF: predicated region fallthrough
CT: control target
= control target key end

     0   :  { %8 = vsyncpa [#allocation3], 0  ;;  %s256_s0 = inlined_call_operand.hbm [shape: f32[16,128], index: 0, kind: input, shape index: {}]   ;;  %s257_s1 = inlined_call_operand.hbm [shape: f32[16,128], index: 1, kind: input, shape index: {}]   ;;  %s258_s2 = inlined_call_operand.vmem [shape: s8[16,128], index: 2, kind: input, shape index: {}]   ;;  %s259_s3 = inlined_call_operand.vmem [shape: f32[1,3,128], index: 3, kind: output, shape index: {}]  }
   0x1   :  { %9 = vsyncpa [#allocation5], 0  ;;  %s175_s12 = smov [#allocation2]   ;;  %s127_s16 = scalar_lea.hbm %s256_s0, 256 }
   0x2   :  { %s15_s13 = sshll.u32 %s175_s12, 4  ;;  %p128_p0 = scmp.ne.s32.totalorder %s256_s0, %s127_s16  ;;  %s16_s13 = int_to_ptr.vmem [resolvable:$true] %s15_s13 }
   0x3   :  { %p131_p1 = scmp.lt.u32.totalorder %s127_s16, %s256_s0 }
   0x5   :  { %p133_p2 = pnand %p131_p1, %p128_p0 }
   0x7   :  { %136 = shalt.err (!%p133_p2)
}
   0x8   :  { %s137_s21 = scalar_lea.vmem %s16_s13, 256  ;;  %p142_p4 = scmp.lt.s32.totalorder %s16_s13, %s16_s13 }
   0x9   :  { %p138_p3 = scmp.ne.s32.totalorder %s16_s13, %s137_s21  ;;  %p143_p5 = scmp.lt.s32.totalorder %s137_s21, %s137_s21 }
   0xb   :  { %p144_p6 = por %p143_p5, %p142_p4 }
   0xd   :  { %p145_p7 = pnand %p144_p6, %p138_p3 }
   0xf   :  { %148 = shalt.err (!%p145_p7)
}
  0x10   :  { %s176_s22 = smov 128   ;;  %s177_s23 = smov 8  }
  0x11   :  { %21 = dma.hbm_to_vmem [thread:$0]  %s256_s0, 256, %s16_s13, [#allocation3], %s176_s22, %s176_s22, %s177_s23  }
  0x12   :  { %s178_s26 = smov [#allocation4]   ;;  %s149_s30 = scalar_lea.hbm %s257_s1, 256 }
  0x13   :  { %s27_s27 = sshll.u32 %s178_s26, 4  ;;  %p150_p8 = scmp.ne.s32.totalorder %s257_s1, %s149_s30  ;;  %s28_s27 = int_to_ptr.vmem [resolvable:$true] %s27_s27 }
  0x14   :  { %p153_p9 = scmp.lt.u32.totalorder %s149_s30, %s257_s1 }
  0x16   :  { %p155_p10 = pnand %p153_p9, %p150_p8 }
  0x18   :  { %158 = shalt.err (!%p155_p10)
}
  0x19   :  { %s159_s8 = scalar_lea.vmem %s28_s27, 256  ;;  %p164_p12 = scmp.lt.s32.totalorder %s28_s27, %s28_s27 }
  0x1a   :  { %p160_p11 = scmp.ne.s32.totalorder %s28_s27, %s159_s8  ;;  %p165_p13 = scmp.lt.s32.totalorder %s159_s8, %s159_s8 }
  0x1c   :  { %p166_p0 = por %p165_p13, %p164_p12 }
  0x1e   :  { %p167_p1 = pnand %p166_p0, %p160_p11 }
  0x20   :  { %170 = shalt.err (!%p167_p1)
}
  0x21   :  { %33 = dma.hbm_to_vmem [thread:$0]  %s257_s1, 256, %s28_s27, [#allocation5], %s176_s22, %s176_s22, %s177_s23  }
  0x22   :  { %171 = dma.done.wait [#allocation3], 256  }
  0x23   :  { %172 = vsyncadd [#allocation3], 4294967040 }
  0x24   :  { %173 = dma.done.wait [#allocation5], 256  }
  0x25   :  { %174 = vsyncadd [#allocation5], 4294967040  ;;  %v44_v0 = vld [vmem:[%s258_s2] sm:$0x3]  ;;  %v45_v1 = vld [vmem:[%s258_s2 + $0x2] sm:$0x3] }
  0x26   :  { %v48_v2 = vld [vmem:[#allocation2] sm:$0xff]  ;;  %vm46_vm0 = vnez %v44_v0  ;;  %vm47_vm1 = vnez %v45_v1  ;;  %v49_v3 = vld [vmem:[#allocation2 + $0x8] sm:$0xff]  ;;  %v179_v6 = vmov 0   ;;  %v52_v13 = vld [vmem:[#allocation4] sm:$0xff]  ;;  %v180_v14 = vmov 0.0  }
  0x27   :  { %v50_v4 = vmax.f32 %v48_v2, 0.0001  ;;  %v51_v5 = vmax.f32 %v49_v3, 0.0001  ;;  %v64_v7 = vsel %vm46_vm0, 16843009, %v179_v6 }
  0x28   :  { %v65_v8 = vsel %vm47_vm1, 16843009, %v179_v6  ;;  %v66_v9 = vunpack.c.0.s8 %v64_v7  ;;  %v53_v17 = vld [vmem:[#allocation4 + $0x8] sm:$0xff]  ;;  %v54_v19 = vmax.f32 %v52_v13, 0.0001 }
  0x29   :  { %119 = vrcp.f32 %v50_v4  ;;  %v67_v10 = vunpack.c.0.s8 %v65_v8  ;;  %v55_v21 = vmax.f32 %v53_v17, 0.0001 }
  0x2a   :  { %121 = vrcp.f32 %v51_v5  ;;  %vm231_vm2 = vcmp.ne.s32.totalorder %v66_v9, 0 }
  0x2b   :  { %vm235_vm3 = vcmp.ne.s32.totalorder %v67_v10, 0  ;;  %v111_v15 = vsel %vm231_vm2, 1.0, %v180_v14 }
  0x2c   :  { %v112_v16 = vsel %vm235_vm3, 1.0, %v180_v14 }
  0x2d   :  { %v94_v18 = vadd.f32 %v112_v16, %v111_v15 }
  0x2f   :  { %v95_v20 = vrot.slane %v94_v18, 4 }
  0x31   :  { %v96_v22 = vadd.f32 %v95_v20, %v94_v18 }
  0x33   :  { %v120_v23 = vpop.eup %119  ;;  %v97_v26 = vrot.slane %v96_v22, 2 }
  0x34   :  { %v122_v24 = vpop.eup %121  ;;  %v57_v25 = vmul.f32 %v120_v23, %v54_v19 }
  0x35   :  { %v59_v27 = vmul.f32 %v122_v24, %v55_v21  ;;  %v98_v28 = vadd.f32 %v97_v26, %v96_v22 }
  0x36   :  { %123 = vlog2.f32 %v57_v25 }
  0x37   :  { %125 = vlog2.f32 %v59_v27  ;;  %v99_v29 = vrot.slane %v98_v28, 1 }
  0x39   :  { %v100_v30 = vadd.f32 %v99_v29, %v98_v28 }
  0x3b   :  { %104 = vst [vmem:[%s259_s3 + $0x2] sm:$0x1] %v100_v30 }
  0x40   :  { %v124_v31 = vpop.eup %123 }
  0x41   :  { %v126_v32 = vpop.eup %125  ;;  %v61_v33 = vmul.f32 0.6931472, %v124_v31 }
  0x42   :  { %v63_v34 = vmul.f32 0.6931472, %v126_v32 }
  0x43   :  { %v70_v35 = vsel %vm231_vm2, %v61_v33, 0.0 }
  0x44   :  { %v71_v36 = vsel %vm235_vm3, %v63_v34, 0.0  ;;  %v84_v37 = vmul.f32 %v70_v35, %v70_v35 }
  0x45   :  { %v76_v38 = vadd.f32 %v71_v36, %v70_v35  ;;  %v85_v39 = vmul.f32 %v71_v36, %v71_v36 }
  0x47   :  { %v77_v40 = vrot.slane %v76_v38, 4  ;;  %v86_v41 = vadd.f32 %v85_v39, %v84_v37 }
  0x49   :  { %v78_v42 = vadd.f32 %v77_v40, %v76_v38  ;;  %v87_v43 = vrot.slane %v86_v41, 4 }
  0x4b   :  { %v79_v44 = vrot.slane %v78_v42, 2  ;;  %v88_v45 = vadd.f32 %v87_v43, %v86_v41 }
  0x4d   :  { %v80_v46 = vadd.f32 %v79_v44, %v78_v42  ;;  %v89_v47 = vrot.slane %v88_v45, 2 }
  0x4f   :  { %v81_v48 = vrot.slane %v80_v46, 1  ;;  %v90_v49 = vadd.f32 %v89_v47, %v88_v45 }
  0x51   :  { %v82_v50 = vadd.f32 %v81_v48, %v80_v46  ;;  %v91_v51 = vrot.slane %v90_v49, 1 }
  0x53   :  { %102 = vst [vmem:[%s259_s3] sm:$0x1] %v82_v50  ;;  %v92_v52 = vadd.f32 %v91_v51, %v90_v49 }
  0x55   :  { %103 = vst [vmem:[%s259_s3 + $0x1] sm:$0x1] %v92_v52 }
  0x56   :  { %109 = vsyncpa [#allocation3], 1 }
  0x57   :  { %110 = vsyncpa [#allocation5], 1 }

</bundles_post_ra>
